<compile_context>
chip_gen: v7x
topology: tpu7x:2x2x1
jax: 0.10.0
libtpu: 0.0.40
codegen_flags: <defaults>
</compile_context>

<pallas_src>
import functools

import jax
import jax.numpy as jnp
from jax import lax
from jax.experimental import pallas as pl
from jax.experimental.pallas import tpu as pltpu


def _round_down(x, m):
    return (x // m) * m


def _vmem_config():
    """Per-generation VMEM limit + block-data budget."""
    try:
        cap = pltpu.get_tpu_info().vmem_capacity_bytes
    except Exception:
        cap = 128 * 1024 * 1024
    if cap <= 64 * 1024 * 1024:
        # v7x-class: 64 MiB physical VMEM per TensorCore.
        return 48 * 1024 * 1024, 16 * 1024 * 1024
    # v5e / v6e: 128 MiB physical VMEM.
    return 96 * 1024 * 1024, 48 * 1024 * 1024


def _pick_feature_tile_fused(N, F, itemsize, budget):
    """Widest lane tile (multiple of 128) for the full-batch fused kernel.

    Counts double-buffered in+out blocks (4*itemsize) plus ~3 live f32
    temporaries per element created in the kernel body.
    """
    if F <= 128:
        return F
    per_lane_bytes = (4 * itemsize + 12) * N
    max_tf = budget // max(per_lane_bytes, 1)
    tf = min(F, 2048, max(128, _round_down(max_tf, 128)))
    tf = max(128, _round_down(tf, 128))
    if tf >= F:
        # Keep >= 2 feature tiles on the 1-D fused grid so both v7x
        # TensorCores get work (harmless on single-TC v5e / v6e).
        half = _round_down(pl.cdiv(F, 2), 128)
        if half >= 128:
            tf = half
    return tf


def _pick_tiles_batched(N, F, bytes_per_elem, budget):
    """(tn, tf) for the batch-tiled kernels.

    Prefers full-width rows (tf = F): fully contiguous DMAs and lane-dense
    output slabs. Only tiles the feature axis when one row-slab at the
    minimum batch tile would not fit the budget.
    """
    min_tn = 8 if N > 8 else N
    if min_tn * F * bytes_per_elem <= budget:
        tf = F
    else:
        max_tf = _round_down(budget // max(min_tn * bytes_per_elem, 1), 128)
        tf = min(F, max(128, max_tf))
    max_tn = budget // max(tf * bytes_per_elem, 1)
    if max_tn >= N:
        tn = N
    else:
        tn = max(min_tn, _round_down(min(max_tn, 4096), 8))
    return tn, tf


# ---------------------------------------------------------------------------
# Kernels
# ---------------------------------------------------------------------------

def _bn_train_fused_kernel(x_ref, gamma_ref, beta_ref, mm_ref, mv_ref,
                           out_ref, new_mm_ref, new_mv_ref, *, eps, momentum):
    """One feature tile of training BatchNorm1d; full batch resident per block."""
    x = x_ref[...].astype(jnp.float32)                        # (N, tf)
    mean = jnp.mean(x, axis=0, keepdims=True)                 # (1, tf)
    diff = x - mean
    var = jnp.mean(diff * diff, axis=0, keepdims=True)        # biased, like .mean(dim=0)

    inv_std = lax.rsqrt(var + eps)                            # EUP
    scale = gamma_ref[...].astype(jnp.float32) * inv_std      # fold gamma/rsqrt
    out_ref[...] = (diff * scale
                    + beta_ref[...].astype(jnp.float32)).astype(out_ref.dtype)

    # moving = momentum * moving + (1 - momentum) * batch   (module's convention)
    new_mm_ref[...] = (momentum * mm_ref[...].astype(jnp.float32)
                       + (1.0 - momentum) * mean).astype(new_mm_ref.dtype)
    new_mv_ref[...] = (momentum * mv_ref[...].astype(jnp.float32)
                       + (1.0 - momentum) * var).astype(new_mv_ref.dtype)


def _bn_stats_kernel(x_ref, mean_ref, var_ref, sum_ref, sumsq_ref,
                     *, n_total, tn, has_tail):
    """Accumulate per-feature sum / sum-of-squares over batch tiles (f32),
    finalizing mean/var in-kernel on the last batch tile."""
    n_idx = pl.program_id(1)
    last = pl.num_programs(1) - 1

    @pl.when(n_idx == 0)
    def _():
        sum_ref[...] = jnp.zeros_like(sum_ref)
        sumsq_ref[...] = jnp.zeros_like(sumsq_ref)

    x = x_ref[...].astype(jnp.float32)                        # (tn, tf)

    if has_tail:
        # Only the single partial tile pays for masking.
        @pl.when(n_idx == last)
        def _():
            row = lax.broadcasted_iota(jnp.int32, x.shape, 0) + n_idx * tn
            xm = jnp.where(row < n_total, x, 0.0)
            sum_ref[...] += jnp.sum(xm, axis=0, keepdims=True)
            sumsq_ref[...] += jnp.sum(xm * xm, axis=0, keepdims=True)

        @pl.when(n_idx != last)
        def _():
            sum_ref[...] += jnp.sum(x, axis=0, keepdims=True)
            sumsq_ref[...] += jnp.sum(x * x, axis=0, keepdims=True)
    else:
        sum_ref[...] += jnp.sum(x, axis=0, keepdims=True)
        sumsq_ref[...] += jnp.sum(x * x, axis=0, keepdims=True)

    @pl.when(n_idx == last)
    def _():
        # TODO(synk): E[x^2]-mean^2 can lose precision for data with mean >> std;
        # a shifted/compensated sum would be more robust than the f32 accumulate.
        mean = sum_ref[...] * (1.0 / n_total)
        var = jnp.maximum(sumsq_ref[...] * (1.0 / n_total) - mean * mean, 0.0)
        mean_ref[...] = mean
        var_ref[...] = var


def _bn_affine_kernel(x_ref, scale_ref, bias_ref, out_ref):
    """out = x * scale + bias with scale/bias pre-folded (1, tf) f32 vectors."""
    x = x_ref[...].astype(jnp.float32)
    out_ref[...] = (x * scale_ref[...] + bias_ref[...]).astype(out_ref.dtype)


# ---------------------------------------------------------------------------
# pallas_call wrappers (all operate on feature-padded arrays: F % 128 == 0 or F <= 128)
# ---------------------------------------------------------------------------

def _bn_train_fused(X, gamma2, beta2, mm2, mv2, *, eps, momentum,
                    vmem_limit, block_budget):
    N, F = X.shape
    itemsize = jnp.dtype(X.dtype).itemsize
    tf = _pick_feature_tile_fused(N, F, itemsize, block_budget)
    grid = (pl.cdiv(F, tf),)

    x_spec = pl.BlockSpec((N, tf), lambda j: (0, j))
    vec_spec = pl.BlockSpec((1, tf), lambda j: (0, j))

    kernel = functools.partial(_bn_train_fused_kernel, eps=eps, momentum=momentum)
    cost = pl.CostEstimate(flops=6 * N * F,
                           transcendentals=F,
                           bytes_accessed=2 * N * F * itemsize + 6 * F * 4)
    return pl.pallas_call(
        kernel,
        grid=grid,
        in_specs=[x_spec, vec_spec, vec_spec, vec_spec, vec_spec],
        out_specs=(x_spec, vec_spec, vec_spec),
        out_shape=(jax.ShapeDtypeStruct((N, F), X.dtype),
                   jax.ShapeDtypeStruct((1, F), jnp.float32),
                   jax.ShapeDtypeStruct((1, F), jnp.float32)),
        compiler_params=pltpu.CompilerParams(
            dimension_semantics=("parallel",),
            vmem_limit_bytes=vmem_limit),
        cost_estimate=cost,
    )(X, gamma2, beta2, mm2, mv2)


def _bn_batch_stats(X, *, vmem_limit, block_budget):
    """Batch-tiled stats pass -> (mean, var), both (1, F) f32, finalized in-kernel."""
    N, F = X.shape
    itemsize = jnp.dtype(X.dtype).itemsize
    # Only the x input is meaningfully double-buffered (outputs are tiny (1, tf)
    # vectors); ~2 live f32 temporaries per element in the body.
    tn, tf = _pick_tiles_batched(N, F, 2 * itemsize + 8, block_budget)
    grid = (pl.cdiv(F, tf), pl.cdiv(N, tn))       # reduction (batch) axis last

    x_spec = pl.BlockSpec((tn, tf), lambda j, n: (n, j))
    vec_spec = pl.BlockSpec((1, tf), lambda j, n: (0, j))

    kernel = functools.partial(_bn_stats_kernel, n_total=N, tn=tn,
                               has_tail=(N % tn != 0))
    cost = pl.CostEstimate(flops=3 * N * F,
                           transcendentals=0,
                           bytes_accessed=N * F * itemsize + 2 * F * 4)
    mean, var = pl.pallas_call(
        kernel,
        grid=grid,
        in_specs=[x_spec],
        out_specs=(vec_spec, vec_spec),
        out_shape=(jax.ShapeDtypeStruct((1, F), jnp.float32),
                   jax.ShapeDtypeStruct((1, F), jnp.float32)),
        scratch_shapes=[pltpu.VMEM((1, tf), jnp.float32),
                        pltpu.VMEM((1, tf), jnp.float32)],
        compiler_params=pltpu.CompilerParams(
            dimension_semantics=("parallel", "arbitrary"),
            vmem_limit_bytes=vmem_limit),
        cost_estimate=cost,
    )(X)
    return mean, var


def _bn_apply(X, scale2, bias2, *, vmem_limit, block_budget):
    """Affine normalization: out = x*scale + bias (eval path + 2nd training pass)."""
    N, F = X.shape
    itemsize = jnp.dtype(X.dtype).itemsize
    # Double-buffered in + out blocks plus ~2 live f32 temporaries per element.
    tn, tf = _pick_tiles_batched(N, F, 4 * itemsize + 8, block_budget)
    grid = (pl.cdiv(F, tf), pl.cdiv(N, tn))

    x_spec = pl.BlockSpec((tn, tf), lambda j, n: (n, j))
    vec_spec = pl.BlockSpec((1, tf), lambda j, n: (0, j))

    cost = pl.CostEstimate(flops=2 * N * F,
                           transcendentals=0,
                           bytes_accessed=2 * N * F * itemsize + 2 * F * 4)
    return pl.pallas_call(
        _bn_affine_kernel,
        grid=grid,
        in_specs=[x_spec, vec_spec, vec_spec],
        out_specs=x_spec,
        out_shape=jax.ShapeDtypeStruct((N, F), X.dtype),
        compiler_params=pltpu.CompilerParams(
            dimension_semantics=("parallel", "parallel"),
            vmem_limit_bytes=vmem_limit),
        cost_estimate=cost,
    )(X, scale2, bias2)


# ---------------------------------------------------------------------------
# Module wrapper
# ---------------------------------------------------------------------------

def _pad_cols(a, Fp, value):
    F = a.shape[-1]
    if Fp == F:
        return a
    return jnp.pad(a, ((0, 0), (0, Fp - F)), constant_values=value)


class MyBatchNormalization1dPallas:
    """JAX/Pallas port of MyBatchNormalization1d (forward pass only)."""
    # TODO(synk): backward pass (custom autograd Function) not implemented; only forward requested.

    def __init__(self, num_features, eps=1e-5, momentum=0.1, dtype=jnp.float32,
                 block_budget_bytes=None, force_batch_tiling=False):
        self.num_features = num_features
        self.eps = float(eps)
        self.momentum = float(momentum)
        vmem_limit, default_budget = _vmem_config()
        self.vmem_limit = vmem_limit
        self.block_budget = int(block_budget_bytes) if block_budget_bytes else default_budget
        self.force_batch_tiling = bool(force_batch_tiling)
        self.gamma = jnp.ones((num_features,), dtype)
        self.beta = jnp.zeros((num_features,), dtype)
        # Stored as (1, F) f32 (matches the module's keepdim=True update shape).
        self.moving_mean = jnp.zeros((1, num_features), jnp.float32)
        self.moving_var = jnp.ones((1, num_features), jnp.float32)
        self.training = True

    def __call__(self, X):
        N, F = X.shape
        itemsize = jnp.dtype(X.dtype).itemsize
        # Pad features to a lane-dense multiple of 128 (sliced back at the end).
        Fp = F if (F <= 128 or F % 128 == 0) else ((F + 127) // 128) * 128
        if F < 128:
            Fp = 128 if F != 128 else F
        Xp = _pad_cols(X, Fp, 0.0)
        gamma2 = _pad_cols(self.gamma.reshape(1, F), Fp, 1.0)
        beta2 = _pad_cols(self.beta.reshape(1, F), Fp, 0.0)
        mm2 = _pad_cols(self.moving_mean.reshape(1, F).astype(jnp.float32), Fp, 0.0)
        mv2 = _pad_cols(self.moving_var.reshape(1, F).astype(jnp.float32), Fp, 1.0)

        if not self.training:
            inv_std = lax.rsqrt(mv2 + self.eps)
            scale = gamma2.astype(jnp.float32) * inv_std
            bias = beta2.astype(jnp.float32) - mm2 * scale
            out = _bn_apply(Xp, scale, bias, vmem_limit=self.vmem_limit,
                            block_budget=self.block_budget)
            return out[:, :F] if Fp != F else out

        # Single-pass fused kernel whenever a >=128-lane full-batch tile
        # (in+out blocks + f32 temporaries) fits the per-chip block budget.
        min_tile_bytes = (4 * itemsize + 12) * N * min(Fp, 128)
        need_two_pass = self.force_batch_tiling or (min_tile_bytes > self.block_budget)

        if not need_two_pass:
            out, new_mm, new_mv = _bn_train_fused(
                Xp, gamma2, beta2, mm2, mv2,
                eps=self.eps, momentum=self.momentum,
                vmem_limit=self.vmem_limit, block_budget=self.block_budget)
        else:
            mean, var = _bn_batch_stats(Xp, vmem_limit=self.vmem_limit,
                                        block_budget=self.block_budget)
            inv_std = lax.rsqrt(var + self.eps)
            scale = gamma2.astype(jnp.float32) * inv_std
            bias = beta2.astype(jnp.float32) - mean * scale
            out = _bn_apply(Xp, scale, bias, vmem_limit=self.vmem_limit,
                            block_budget=self.block_budget)
            new_mm = self.momentum * mm2 + (1.0 - self.momentum) * mean
            new_mv = self.momentum * mv2 + (1.0 - self.momentum) * var

        # Module keeps moving stats with keepdim=True -> (1, F).
        self.moving_mean = new_mm[:, :F]
        self.moving_var = new_mv[:, :F]
        return out[:, :F] if Fp != F else out


def _reference_train(X, gamma, beta, eps, momentum, moving_mean, moving_var):
    mean = jnp.mean(X, axis=0, keepdims=True)
    var = jnp.mean((X - mean) ** 2, axis=0, keepdims=True)
    x_norm = (X - mean) / jnp.sqrt(var + eps)
    out = gamma[None, :] * x_norm + beta[None, :]
    new_mm = momentum * moving_mean.reshape(1, -1) + (1 - momentum) * mean
    new_mv = momentum * moving_var.reshape(1, -1) + (1 - momentum) * var
    return out, new_mm, new_mv


if __name__ == "__main__":
    key = jax.random.PRNGKey(0)
    N, F = 16, 64  # batch=16, num_features=64
    X = jax.random.normal(key, (N, F), dtype=jnp.float32)

    bn = MyBatchNormalization1dPallas(num_features=F, eps=1e-5, momentum=0.1)
    bn.gamma = jnp.linspace(0.5, 1.5, F, dtype=jnp.float32)
    bn.beta = jnp.linspace(-0.25, 0.25, F, dtype=jnp.float32)

    gamma0, beta0 = bn.gamma, bn.beta
    mm0, mv0 = bn.moving_mean, bn.moving_var

    # --- Training forward (fused full-batch kernel, padded to 128 lanes) ---
    out = jax.block_until_ready(bn(X))
    ref_out, ref_mm, ref_mv = _reference_train(
        X, gamma0, beta0, bn.eps, bn.momentum, mm0, mv0)
    assert jnp.allclose(out, ref_out, atol=1e-5, rtol=1e-5)
    assert jnp.allclose(bn.moving_mean, ref_mm, atol=1e-6, rtol=1e-6)
    assert jnp.allclose(bn.moving_var, ref_mv, atol=1e-6, rtol=1e-6)

    # --- Eval forward (affine-apply kernel with moving stats) ---
    bn.training = False
    out_eval = jax.block_until_ready(bn(X))
    ref_eval = gamma0[None, :] * (X - ref_mm) / jnp.sqrt(ref_mv + bn.eps) + beta0[None, :]
    assert jnp.allclose(out_eval, ref_eval, atol=1e-5, rtol=1e-5)

    # --- Batch-tiled two-pass training path (large-N fallback), with a tiny
    # block budget to force multiple batch tiles incl. a partial last tile. ---
    N2 = 20
    X2 = jax.random.normal(jax.random.PRNGKey(1), (N2, F), dtype=jnp.float32)
    bn2 = MyBatchNormalization1dPallas(num_features=F, eps=1e-5, momentum=0.1,
                                       block_budget_bytes=4096,
                                       force_batch_tiling=True)
    bn2.gamma, bn2.beta = gamma0, beta0
    out2 = jax.block_until_ready(bn2(X2))
    ref_out2, ref_mm2, ref_mv2 = _reference_train(
        X2, gamma0, beta0, bn2.eps, bn2.momentum,
        jnp.zeros((F,), jnp.float32), jnp.ones((F,), jnp.float32))
    assert jnp.allclose(out2, ref_out2, atol=1e-5, rtol=1e-5)
    assert jnp.allclose(bn2.moving_mean, ref_mm2, atol=1e-5, rtol=1e-5)
    assert jnp.allclose(bn2.moving_var, ref_mv2, atol=1e-5, rtol=1e-5)

    print("KERNEL_OK")
</pallas_src>

<mosaic_0001>
module attributes {stable_mosaic.version = 11 : i64} {
  func.func @_bn_train_fused_kernel(%arg0: i32, %arg1: memref<16x128xf32, #tpu.memory_space<vmem>>, %arg2: memref<1x128xf32, #tpu.memory_space<vmem>>, %arg3: memref<1x128xf32, #tpu.memory_space<vmem>>, %arg4: memref<1x128xf32, #tpu.memory_space<vmem>>, %arg5: memref<1x128xf32, #tpu.memory_space<vmem>>, %arg6: memref<16x128xf32, #tpu.memory_space<vmem>>, %arg7: memref<1x128xf32, #tpu.memory_space<vmem>>, %arg8: memref<1x128xf32, #tpu.memory_space<vmem>>) attributes {dimension_semantics = [#tpu.dimension_semantics<parallel>], iteration_bounds = array<i64: 1>, scalar_prefetch = 0 : i64, scratch_operands = 0 : i64, tpu.core_type = #tpu.core_type<tc>, window_params = [{transform_indices = @transform_0, window_bounds = array<i64: 16, 128>}, {transform_indices = @transform_1, window_bounds = array<i64: 1, 128>}, {transform_indices = @transform_2, window_bounds = array<i64: 1, 128>}, {transform_indices = @transform_3, window_bounds = array<i64: 1, 128>}, {transform_indices = @transform_4, window_bounds = array<i64: 1, 128>}, {transform_indices = @transform_5, window_bounds = array<i64: 16, 128>}, {transform_indices = @transform_6, window_bounds = array<i64: 1, 128>}, {transform_indices = @transform_7, window_bounds = array<i64: 1, 128>}]} {
    %c0 = arith.constant 0 : index
    %c0_0 = arith.constant 0 : index
    %0 = vector.load %arg1[%c0, %c0_0] : memref<16x128xf32, #tpu.memory_space<vmem>>, vector<16x128xf32>
    %cst = arith.constant dense<0.000000e+00> : vector<128xf32>
    %1 = vector.multi_reduction <add>, %0, %cst [0] : vector<16x128xf32> to vector<128xf32>
    %2 = vector.shape_cast %1 : vector<128xf32> to vector<1x128xf32>
    %cst_1 = arith.constant 1.600000e+01 : f32
    %3 = vector.broadcast %cst_1 : f32 to vector<1x128xf32>
    %4 = arith.divf %2, %3 : vector<1x128xf32>
    %5 = vector.broadcast %4 : vector<1x128xf32> to vector<16x128xf32>
    %6 = arith.subf %0, %5 : vector<16x128xf32>
    %7 = arith.mulf %6, %6 : vector<16x128xf32>
    %cst_2 = arith.constant dense<0.000000e+00> : vector<128xf32>
    %8 = vector.multi_reduction <add>, %7, %cst_2 [0] : vector<16x128xf32> to vector<128xf32>
    %9 = vector.shape_cast %8 : vector<128xf32> to vector<1x128xf32>
    %cst_3 = arith.constant 1.600000e+01 : f32
    %10 = vector.broadcast %cst_3 : f32 to vector<1x128xf32>
    %11 = arith.divf %9, %10 : vector<1x128xf32>
    %cst_4 = arith.constant 9.99999974E-6 : f32
    %12 = vector.broadcast %cst_4 : f32 to vector<1x128xf32>
    %13 = arith.addf %11, %12 : vector<1x128xf32>
    %14 = math.rsqrt %13 : vector<1x128xf32>
    %c0_5 = arith.constant 0 : index
    %c0_6 = arith.constant 0 : index
    %15 = vector.load %arg2[%c0_5, %c0_6] : memref<1x128xf32, #tpu.memory_space<vmem>>, vector<1x128xf32>
    %16 = arith.mulf %15, %14 : vector<1x128xf32>
    %17 = vector.broadcast %16 : vector<1x128xf32> to vector<16x128xf32>
    %18 = arith.mulf %6, %17 : vector<16x128xf32>
    %c0_7 = arith.constant 0 : index
    %c0_8 = arith.constant 0 : index
    %19 = vector.load %arg3[%c0_7, %c0_8] : memref<1x128xf32, #tpu.memory_space<vmem>>, vector<1x128xf32>
    %20 = vector.broadcast %19 : vector<1x128xf32> to vector<16x128xf32>
    %21 = arith.addf %18, %20 : vector<16x128xf32>
    %c0_9 = arith.constant 0 : index
    %c0_10 = arith.constant 0 : index
    %22 = vector.load %arg6[%c0_9, %c0_10] : memref<16x128xf32, #tpu.memory_space<vmem>>, vector<16x128xf32>
    tpu.vector_store %arg6[%c0_9, %c0_10], %21 {strides = array<i32>} : memref<16x128xf32, #tpu.memory_space<vmem>>, vector<16x128xf32>,
    %c0_11 = arith.constant 0 : index
    %c0_12 = arith.constant 0 : index
    %23 = vector.load %arg4[%c0_11, %c0_12] : memref<1x128xf32, #tpu.memory_space<vmem>>, vector<1x128xf32>
    %cst_13 = arith.constant 1.000000e-01 : f32
    %24 = vector.broadcast %cst_13 : f32 to vector<1x128xf32>
    %25 = arith.mulf %24, %23 : vector<1x128xf32>
    %cst_14 = arith.constant 0.899999976 : f32
    %26 = vector.broadcast %cst_14 : f32 to vector<1x128xf32>
    %27 = arith.mulf %26, %4 : vector<1x128xf32>
    %28 = arith.addf %25, %27 : vector<1x128xf32>
    %c0_15 = arith.constant 0 : index
    %c0_16 = arith.constant 0 : index
    %29 = vector.load %arg7[%c0_15, %c0_16] : memref<1x128xf32, #tpu.memory_space<vmem>>, vector<1x128xf32>
    tpu.vector_store %arg7[%c0_15, %c0_16], %28 {strides = array<i32>} : memref<1x128xf32, #tpu.memory_space<vmem>>, vector<1x128xf32>,
    %c0_17 = arith.constant 0 : index
    %c0_18 = arith.constant 0 : index
    %30 = vector.load %arg5[%c0_17, %c0_18] : memref<1x128xf32, #tpu.memory_space<vmem>>, vector<1x128xf32>
    %cst_19 = arith.constant 1.000000e-01 : f32
    %31 = vector.broadcast %cst_19 : f32 to vector<1x128xf32>
    %32 = arith.mulf %31, %30 : vector<1x128xf32>
    %cst_20 = arith.constant 0.899999976 : f32
    %33 = vector.broadcast %cst_20 : f32 to vector<1x128xf32>
    %34 = arith.mulf %33, %11 : vector<1x128xf32>
    %35 = arith.addf %32, %34 : vector<1x128xf32>
    %c0_21 = arith.constant 0 : index
    %c0_22 = arith.constant 0 : index
    %36 = vector.load %arg8[%c0_21, %c0_22] : memref<1x128xf32, #tpu.memory_space<vmem>>, vector<1x128xf32>
    tpu.vector_store %arg8[%c0_21, %c0_22], %35 {strides = array<i32>} : memref<1x128xf32, #tpu.memory_space<vmem>>, vector<1x128xf32>,
    return
  }
  func.func @transform_0(%arg0: i32) -> (i32, i32) {
    %c0_i32 = arith.constant 0 : i32
    %c0_i32_0 = arith.constant 0 : i32
    return %c0_i32, %arg0 : i32, i32
  }
  func.func @transform_1(%arg0: i32) -> (i32, i32) {
    %c0_i32 = arith.constant 0 : i32
    %c0_i32_0 = arith.constant 0 : i32
    return %c0_i32, %arg0 : i32, i32
  }
  func.func @transform_2(%arg0: i32) -> (i32, i32) {
    %c0_i32 = arith.constant 0 : i32
    %c0_i32_0 = arith.constant 0 : i32
    return %c0_i32, %arg0 : i32, i32
  }
  func.func @transform_3(%arg0: i32) -> (i32, i32) {
    %c0_i32 = arith.constant 0 : i32
    %c0_i32_0 = arith.constant 0 : i32
    return %c0_i32, %arg0 : i32, i32
  }
  func.func @transform_4(%arg0: i32) -> (i32, i32) {
    %c0_i32 = arith.constant 0 : i32
    %c0_i32_0 = arith.constant 0 : i32
    return %c0_i32, %arg0 : i32, i32
  }
  func.func @transform_5(%arg0: i32) -> (i32, i32) {
    %c0_i32 = arith.constant 0 : i32
    %c0_i32_0 = arith.constant 0 : i32
    return %c0_i32, %arg0 : i32, i32
  }
  func.func @transform_6(%arg0: i32) -> (i32, i32) {
    %c0_i32 = arith.constant 0 : i32
    %c0_i32_0 = arith.constant 0 : i32
    return %c0_i32, %arg0 : i32, i32
  }
  func.func @transform_7(%arg0: i32) -> (i32, i32) {
    %c0_i32 = arith.constant 0 : i32
    %c0_i32_0 = arith.constant 0 : i32
    return %c0_i32, %arg0 : i32, i32
  }
}

</mosaic_0001>

<bundles_post_ra>
// kernel: tpu_custom_call.1
= control target key start
LH: loop header
LB: loop body
LE: loop exit
PB: predicated region body
PF: predicated region fallthrough
CT: control target
= control target key end

     0   :  { %13 = vsyncpa [#allocation3], 0  ;;  %s543_s0 = inlined_call_operand.hbm [shape: f32[16,128], index: 0, kind: input, shape index: {}]   ;;  %s544_s1 = inlined_call_operand.hbm [shape: f32[1,128], index: 1, kind: input, shape index: {}]   ;;  %s545_s2 = inlined_call_operand.hbm [shape: f32[1,128], index: 2, kind: input, shape index: {}]   ;;  %s546_s3 = inlined_call_operand.hbm [shape: f32[1,128], index: 3, kind: input, shape index: {}]   ;;  %s547_s4 = inlined_call_operand.hbm [shape: f32[1,128], index: 4, kind: input, shape index: {}]   ;;  %s548_s5 = inlined_call_operand.hbm [shape: f32[16,128], index: 5, kind: output, shape index: {0}]   ;;  %s549_s6 = inlined_call_operand.hbm [shape: f32[1,128], index: 6, kind: output, shape index: {1}]   ;;  %s550_s7 = inlined_call_operand.hbm [shape: f32[1,128], index: 7, kind: output, shape index: {2}]  }
   0x1   :  { %14 = vsyncpa [#allocation6], 0 }
   0x2   :  { %15 = vsyncpa [#allocation9], 0 }
   0x3   :  { %16 = vsyncpa [#allocation4], 0 }
   0x4   :  { %17 = vsyncpa [#allocation13], 0  ;;  %s386_s24 = smov [#allocation5]   ;;  %s387_s26 = smov [#allocation8]  }
   0x5   :  { %s36_s25 = sshll.u32 %s386_s24, 4  ;;  %s56_s27 = sshll.u32 %s387_s26, 4  ;;  %s37_s25 = int_to_ptr.vmem [resolvable:$true] %s36_s25  ;;  %s57_s27 = int_to_ptr.vmem [resolvable:$true] %s56_s27 }
   0x6   :  { %s200_s30 = scalar_lea.hbm %s544_s1, 16 }
   0x7   :  { %p201_p0 = scmp.ne.s32.totalorder %s544_s1, %s200_s30  ;;  %p204_p1 = scmp.lt.u32.totalorder %s200_s30, %s544_s1 }
   0x9   :  { %p206_p2 = pnand %p204_p1, %p201_p0 }
   0xb   :  { %209 = shalt.err (!%p206_p2)
}
   0xc   :  { %s210_s12 = scalar_lea.vmem %s37_s25, 16  ;;  %s214_s13 = scalar_lea.vmem %s37_s25, 32 }
   0xd   :  { %p211_p3 = scmp.ne.s32.totalorder %s37_s25, %s210_s12  ;;  %p215_p4 = scmp.lt.s32.totalorder %s37_s25, %s37_s25 }
   0xe   :  { %p216_p5 = scmp.lt.s32.totalorder %s214_s13, %s210_s12 }
  0x10   :  { %p217_p6 = por %p216_p5, %p215_p4 }
  0x12   :  { %p218_p7 = pnand %p217_p6, %p211_p3 }
  0x14   :  { %221 = shalt.err (!%p218_p7)
}
  0x15   :  { %39 = dma.hbm_to_vmem [thread:$0]  %s544_s1, 16, %s37_s25, [#allocation6]  }
  0x16   :  { %s222_s18 = scalar_lea.hbm %s546_s3, 16 }
  0x17   :  { %p223_p8 = scmp.ne.s32.totalorder %s546_s3, %s222_s18  ;;  %p226_p9 = scmp.lt.u32.totalorder %s222_s18, %s546_s3 }
  0x19   :  { %p228_p10 = pnand %p226_p9, %p223_p8 }
  0x1b   :  { %231 = shalt.err (!%p228_p10)
}
  0x1c   :  { %s232_s23 = scalar_lea.vmem %s57_s27, 16  ;;  %s236_s24 = scalar_lea.vmem %s57_s27, 32 }
  0x1d   :  { %p233_p11 = scmp.ne.s32.totalorder %s57_s27, %s232_s23  ;;  %p237_p12 = scmp.lt.s32.totalorder %s57_s27, %s57_s27 }
  0x1e   :  { %p238_p13 = scmp.lt.s32.totalorder %s236_s24, %s232_s23 }
  0x20   :  { %p239_p0 = por %p238_p13, %p237_p12 }
  0x22   :  { %p240_p1 = pnand %p239_p0, %p233_p11 }
  0x24   :  { %243 = shalt.err (!%p240_p1)
}
  0x25   :  { %59 = dma.hbm_to_vmem [thread:$0]  %s546_s3, 16, %s57_s27, [#allocation9]  }
  0x26   :  { %s388_s26 = smov [#allocation2]   ;;  %s244_s8 = scalar_lea.hbm %s543_s0, 256 }
  0x27   :  { %s23_s28 = sshll.u32 %s388_s26, 4  ;;  %p245_p2 = scmp.ne.s32.totalorder %s543_s0, %s244_s8  ;;  %s24_s28 = int_to_ptr.vmem [resolvable:$true] %s23_s28 }
  0x28   :  { %p248_p3 = scmp.lt.u32.totalorder %s244_s8, %s543_s0 }
  0x2a   :  { %p250_p4 = pnand %p248_p3, %p245_p2 }
  0x2c   :  { %253 = shalt.err (!%p250_p4)
}
  0x2d   :  { %s254_s13 = scalar_lea.vmem %s24_s28, 256  ;;  %p259_p6 = scmp.lt.s32.totalorder %s24_s28, %s24_s28 }
  0x2e   :  { %p255_p5 = scmp.ne.s32.totalorder %s24_s28, %s254_s13  ;;  %p260_p7 = scmp.lt.s32.totalorder %s254_s13, %s254_s13 }
  0x30   :  { %p261_p8 = por %p260_p7, %p259_p6 }
  0x32   :  { %p262_p9 = pnand %p261_p8, %p255_p5 }
  0x34   :  { %265 = shalt.err (!%p262_p9)
}
  0x35   :  { %s389_s3 = smov 128   ;;  %s390_s27 = smov 8  }
  0x36   :  { %29 = dma.hbm_to_vmem [thread:$0]  %s543_s0, 256, %s24_s28, [#allocation3], %s389_s3, %s389_s3, %s390_s27  }
  0x37   :  { %s391_s16 = smov [#allocation7]   ;;  %s392_s18 = smov [#allocation10]  }
  0x38   :  { %s46_s17 = sshll.u32 %s391_s16, 4  ;;  %s66_s19 = sshll.u32 %s392_s18, 4  ;;  %s47_s17 = int_to_ptr.vmem [resolvable:$true] %s46_s17  ;;  %s67_s19 = int_to_ptr.vmem [resolvable:$true] %s66_s19 }
  0x39   :  { %s266_s22 = scalar_lea.hbm %s545_s2, 16 }
  0x3a   :  { %p267_p10 = scmp.ne.s32.totalorder %s545_s2, %s266_s22  ;;  %p270_p11 = scmp.lt.u32.totalorder %s266_s22, %s545_s2 }
  0x3c   :  { %p272_p12 = pnand %p270_p11, %p267_p10 }
  0x3e   :  { %275 = shalt.err (!%p272_p12)
}
  0x3f   :  { %s276_s0 = scalar_lea.vmem %s47_s17, 16  ;;  %s280_s26 = scalar_lea.vmem %s47_s17, 32 }
  0x40   :  { %p277_p13 = scmp.ne.s32.totalorder %s47_s17, %s276_s0  ;;  %p281_p0 = scmp.lt.s32.totalorder %s47_s17, %s47_s17 }
  0x41   :  { %p282_p1 = scmp.lt.s32.totalorder %s280_s26, %s276_s0 }
  0x43   :  { %p283_p2 = por %p282_p1, %p281_p0 }
  0x45   :  { %p284_p3 = pnand %p283_p2, %p277_p13 }
  0x47   :  { %287 = shalt.err (!%p284_p3)
}
  0x48   :  { %49 = dma.hbm_to_vmem [thread:$0]  %s545_s2, 16, %s47_s17, [#allocation6]  }
  0x49   :  { %s288_s9 = scalar_lea.hbm %s547_s4, 16 }
  0x4a   :  { %p289_p4 = scmp.ne.s32.totalorder %s547_s4, %s288_s9  ;;  %p292_p5 = scmp.lt.u32.totalorder %s288_s9, %s547_s4 }
  0x4c   :  { %p294_p6 = pnand %p292_p5, %p289_p4 }
  0x4e   :  { %297 = shalt.err (!%p294_p6)
}
  0x4f   :  { %s298_s14 = scalar_lea.vmem %s67_s19, 16  ;;  %s302_s15 = scalar_lea.vmem %s67_s19, 32 }
  0x50   :  { %p299_p7 = scmp.ne.s32.totalorder %s67_s19, %s298_s14  ;;  %p303_p8 = scmp.lt.s32.totalorder %s67_s19, %s67_s19 }
  0x51   :  { %p304_p9 = scmp.lt.s32.totalorder %s302_s15, %s298_s14 }
  0x53   :  { %p305_p10 = por %p304_p9, %p303_p8 }
  0x55   :  { %p306_p11 = pnand %p305_p10, %p299_p7 }
  0x57   :  { %309 = shalt.err (!%p306_p11)
}
  0x58   :  { %69 = dma.hbm_to_vmem [thread:$0]  %s547_s4, 16, %s67_s19, [#allocation9]  }
  0x59   :  { %376 = dma.done.wait [#allocation3], 256  }
  0x5a   :  { %377 = vsyncadd [#allocation3], 4294967040 }
  0x5b   :  { %378 = dma.done.wait [#allocation6], 32  }
  0x5c   :  { %379 = vsyncadd [#allocation6], 4294967264 }
  0x5d   :  { %380 = dma.done.wait [#allocation9], 32  }
  0x5e   :  { %381 = vsyncadd [#allocation9], 4294967264  ;;  %v85_v0 = vld [vmem:[#allocation2] sm:$0xff]  ;;  %v86_v1 = vld [vmem:[#allocation2 + $0x8] sm:$0xff]  ;;  %s393_s17 = smov [#allocation12]  }
  0x5f   :  { %v87_v2 = vadd.f32 %v86_v1, %v85_v0  ;;  %v131_v8 = vld [vmem:[#allocation8] sm:$0x1]  ;;  %s159_s4 = sshll.u32 %s393_s17, 4  ;;  %s160_s4 = int_to_ptr.vmem [resolvable:$true] %s159_s4 }
  0x60   :  { %v132_v11 = vmul.f32 0.1, %v131_v8  ;;  %s310_s18 = scalar_lea.vmem %s160_s4, 16  ;;  %s314_s19 = scalar_lea.vmem %s160_s4, 32 }
  0x61   :  { %v88_v3 = vrot.slane %v87_v2, 4  ;;  %p311_p12 = scmp.ne.s32.totalorder %s160_s4, %s310_s18  ;;  %p315_p13 = scmp.lt.s32.totalorder %s160_s4, %s160_s4 }
  0x62   :  { %p316_p0 = scmp.lt.s32.totalorder %s314_s19, %s310_s18 }
  0x63   :  { %v89_v4 = vadd.f32 %v88_v3, %v87_v2 }
  0x64   :  { %p317_p1 = por %p316_p0, %p315_p13 }
  0x65   :  { %v90_v5 = vrot.slane %v89_v4, 2 }
  0x66   :  { %p318_p2 = pnand %p317_p1, %p311_p12 }
  0x67   :  { %v91_v6 = vadd.f32 %v90_v5, %v89_v4 }
  0x69   :  { %v92_v7 = vrot.slane %v91_v6, 1 }
  0x6b   :  { %v93_v9 = vadd.f32 %v92_v7, %v91_v6 }
  0x6d   :  { %v95_v10 = vmul.f32 0.0625, %v93_v9 }
  0x6f   :  { %v499_v12 = vsub.f32 %v86_v1, %v95_v10  ;;  %v133_v13 = vmul.f32 0.9, %v95_v10  ;;  %v96_v14 = vsub.f32 %v85_v0, %v95_v10 }
  0x71   :  { %v134_v15 = vadd.f32 %v133_v13, %v132_v11  ;;  %v98_v16 = vmul.f32 %v96_v14, %v96_v14  ;;  %v99_v17 = vmul.f32 %v499_v12, %v499_v12 }
  0x73   :  { %135 = vst [vmem:[#allocation12] sm:$0x1] %v134_v15  ;;  %v100_v18 = vadd.f32 %v99_v17, %v98_v16 }
  0x74   :  { %321 = shalt.err (!%p318_p2)
}
  0x75   :  { %s322_s22 = scalar_lea.hbm %s549_s6, 16 }
  0x76   :  { %p323_p3 = scmp.ne.s32.totalorder %s549_s6, %s322_s22  ;;  %p326_p4 = scmp.lt.u32.totalorder %s322_s22, %s549_s6 }
  0x78   :  { %p328_p5 = pnand %p326_p4, %p323_p3 }
  0x7a   :  { %331 = shalt.err (!%p328_p5)
}
  0x7b   :  { %162 = dma.vmem_to_hbm [thread:$0]  %s160_s4, 16, %s549_s6, [#allocation13]   ;;  %v101_v19 = vrot.slane %v100_v18, 4  ;;  %v136_v24 = vld [vmem:[#allocation10] sm:$0x1]  ;;  %v113_v31 = vlaneseq }
  0x7c   :  { %v137_v27 = vmul.f32 0.1, %v136_v24  ;;  %s394_s28 = smov [#allocation14]  }
  0x7d   :  { %v102_v20 = vadd.f32 %v101_v19, %v100_v18  ;;  %s169_s29 = sshll.u32 %s394_s28, 4  ;;  %s170_s29 = int_to_ptr.vmem [resolvable:$true] %s169_s29 }
  0x7e   :  { %s332_s30 = scalar_lea.vmem %s170_s29, 16  ;;  %s336_s6 = scalar_lea.vmem %s170_s29, 32 }
  0x7f   :  { %v103_v21 = vrot.slane %v102_v20, 2  ;;  %p333_p6 = scmp.ne.s32.totalorder %s170_s29, %s332_s30  ;;  %p337_p7 = scmp.lt.s32.totalorder %s170_s29, %s170_s29 }
  0x80   :  { %p338_p8 = scmp.lt.s32.totalorder %s336_s6, %s332_s30 }
  0x81   :  { %v104_v22 = vadd.f32 %v103_v21, %v102_v20 }
  0x82   :  { %p339_p9 = por %p338_p8, %p337_p7 }
  0x83   :  { %v105_v23 = vrot.slane %v104_v22, 1 }
  0x84   :  { %p340_p10 = pnand %p339_p9, %p333_p6 }
  0x85   :  { %v106_v25 = vadd.f32 %v105_v23, %v104_v22 }
  0x87   :  { %v107_v26 = vmul.f32 0.0625, %v106_v25 }
  0x89   :  { %v108_v28 = vadd.f32 1e-05, %v107_v26  ;;  %v138_v29 = vmul.f32 0.9, %v107_v26 }
  0x8b   :  { %198 = vrsqrt.f32 %v108_v28  ;;  %v139_v30 = vadd.f32 %v138_v29, %v137_v27 }
  0x8d   :  { %140 = vst [vmem:[#allocation14] sm:$0x1] %v139_v30 }
  0x8e   :  { %343 = shalt.err (!%p340_p10)
}
  0x8f   :  { %s344_s10 = scalar_lea.hbm %s550_s7, 16 }
  0x90   :  { %p345_p11 = scmp.ne.s32.totalorder %s550_s7, %s344_s10  ;;  %p348_p12 = scmp.lt.u32.totalorder %s344_s10, %s550_s7 }
  0x92   :  { %p350_p13 = pnand %p348_p12, %p345_p11 }
  0x94   :  { %353 = shalt.err (!%p350_p13)
}
  0x95   :  { %172 = dma.vmem_to_hbm [thread:$0]  %s170_s29, 16, %s550_s7, [#allocation13]   ;;  %v114_v32 = vshrl.u32 %v113_v31, 7  ;;  %v110_v33 = vld [vmem:[#allocation5] sm:$0x1]  ;;  %v199_v35 = vpop.eup %198 }
  0x96   :  { %v111_v36 = vmul.f32 %v199_v35, %v110_v33  ;;  %v187_v38 = vld [vmem:[#allocation7] ss:$0 sm:$0xff]  ;;  %s395_s16 = smov [#allocation11]  }
  0x97   :  { %v115_v34 = vsub.s32 0, %v114_v32  ;;  %s146_s17 = sshll.u32 %s395_s16, 4  ;;  %s147_s17 = int_to_ptr.vmem [resolvable:$true] %s146_s17 }
  0x98   :  { %s354_s4 = scalar_lea.vmem %s147_s17, 256  ;;  %p359_p1 = scmp.lt.s32.totalorder %s147_s17, %s147_s17 }
  0x99   :  { %v116_v37 = vrot.slane %v111_v36, %v115_v34  ;;  %p355_p0 = scmp.ne.s32.totalorder %s147_s17, %s354_s4  ;;  %p360_p2 = scmp.lt.s32.totalorder %s354_s4, %s354_s4 }
  0x9b   :  { %v118_v39 = vmul.f32 %v116_v37, %v96_v14  ;;  %v119_v40 = vmul.f32 %v116_v37, %v499_v12  ;;  %p361_p3 = por %p360_p2, %p359_p1 }
  0x9d   :  { %v127_v41 = vadd.f32 %v187_v38, %v118_v39  ;;  %v128_v42 = vadd.f32 %v187_v38, %v119_v40  ;;  %p362_p4 = pnand %p361_p3, %p355_p0 }
  0x9f   :  { %129 = vst [vmem:[#allocation11] sm:$0xff] %v127_v41  ;;  %130 = vst [vmem:[#allocation11 + $0x8] sm:$0xff] %v128_v42 }
  0xa0   :  { %365 = shalt.err (!%p362_p4)
}
  0xa1   :  { %s366_s19 = scalar_lea.hbm %s548_s5, 256 }
  0xa2   :  { %p367_p5 = scmp.ne.s32.totalorder %s548_s5, %s366_s19  ;;  %p370_p6 = scmp.lt.u32.totalorder %s366_s19, %s548_s5 }
  0xa4   :  { %p372_p7 = pnand %p370_p6, %p367_p5 }
  0xa6   :  { %375 = shalt.err (!%p372_p7)
}
  0xa7   :  { %152 = dma.vmem_to_hbm [thread:$0]  %s147_s17, 256, %s548_s5, [#allocation4], %s389_s3, %s389_s3, %s390_s27  }
  0xa8   :  { %382 = dma.done.wait [#allocation4], 256  }
  0xa9   :  { %383 = vsyncadd [#allocation4], 4294967040 }
  0xaa   :  { %384 = dma.done.wait [#allocation13], 32  }
  0xab   :  { %385 = vsyncadd [#allocation13], 4294967264 }
  0xac   :  { %182 = vsyncpa [#allocation3], 1 }
  0xad   :  { %183 = vsyncpa [#allocation6], 1 }
  0xae   :  { %184 = vsyncpa [#allocation9], 1 }
  0xaf   :  { %185 = vsyncpa [#allocation4], 1 }
  0xb0   :  { %186 = vsyncpa [#allocation13], 1 }

</bundles_post_ra>
